<compile_context>
chip_gen: v6e
topology: v6e:2x2x1
jax: 0.10.0
libtpu: 0.0.40
codegen_flags: <defaults>
</compile_context>

<pallas_src>
import functools

import jax
import jax.numpy as jnp
from jax import lax
from jax.experimental import pallas as pl
from jax.experimental.pallas import tpu as pltpu


def _round_up(v, m):
    return ((v + m - 1) // m) * m


def _pick_tile(n, cap):
    """Largest power-of-two tile in [128, cap] that divides n; else n (full dim)."""
    t = cap
    while t >= 128:
        if n % t == 0:
            return t
        t //= 2
    return n


# --------------------- Pass 1: fused [theta | phi | g] projection ---------------------

def _qkv_proj_kernel(x_ref, w_ref, b_ref, theta_ref, phig_ref, *, cip):
    # x_ref: (1, C, tm) f32 ; w_ref: (3*Cip, C) bf16 ; b_ref: (3*Cip, 1) f32
    x = x_ref[0].astype(jnp.bfloat16)                                 # (C, tm)
    r = jnp.dot(w_ref[...], x, preferred_element_type=jnp.float32) + b_ref[...]
    # theta goes out row-major (query side); phi|g stay channel-major so pass 2 reads
    # one contiguous key-side stream.
    theta_ref[0] = jnp.transpose(r[:cip]).astype(jnp.bfloat16)        # (tm, Cip)
    phig_ref[0] = r[cip:].astype(jnp.bfloat16)                        # (2*Cip, tm)


# ------------- Pass 2a: resident-keys flash (keys live in VMEM per batch) -------------

def _attn_resident_kernel(theta_ref, phig_ref, x_ref, ww_ref, bw_ref, o_ref,
                          m_sc, l_sc, acc_sc, *, cip, kc):
    theta = theta_ref[0]                                              # (tq, Cip) bf16
    m_sc[...] = jnp.full_like(m_sc, -jnp.inf)
    l_sc[...] = jnp.zeros_like(l_sc)
    acc_sc[...] = jnp.zeros_like(acc_sc)
    n_chunks = phig_ref.shape[2] // kc

    def chunk_body(c, carry):
        start = pl.multiple_of(c * kc, kc)
        pg = phig_ref[0, :, pl.ds(start, kc)]                         # (2*Cip, kc) bf16
        phi, g = pg[:cip], pg[cip:]
        s = jnp.dot(theta, phi, preferred_element_type=jnp.float32)   # (tq, kc)
        m_prev = m_sc[...]
        m_new = jnp.maximum(m_prev, jnp.max(s, axis=-1, keepdims=True))
        alpha = jnp.exp(m_prev - m_new)
        p = jnp.exp(s - m_new)
        l_sc[...] = alpha * l_sc[...] + jnp.sum(p, axis=-1, keepdims=True)
        acc_sc[...] = alpha * acc_sc[...] + lax.dot_general(
            p.astype(jnp.bfloat16), g, (((1,), (1,)), ((), ())),
            preferred_element_type=jnp.float32)                       # (tq, Cip)
        m_sc[...] = m_new
        return carry

    lax.fori_loop(0, n_chunks, chunk_body, 0)

    inv_l = pl.reciprocal(l_sc[...], approx=True)
    y = (acc_sc[...] * inv_l).astype(jnp.bfloat16)                    # (tq, Cip)
    w_yt = lax.dot_general(ww_ref[...], y, (((1,), (1,)), ((), ())),
                           preferred_element_type=jnp.float32)        # (C, tq)
    o_ref[0] = x_ref[0] + w_yt + bw_ref[...]                          # residual add


# --------------------- Pass 2b: tiled flash fallback (grid B, nq, nk) ------------------

def _attn_flash_kernel(theta_ref, phig_ref, x_ref, ww_ref, bw_ref, o_ref,
                       m_sc, l_sc, acc_sc, *, cip):
    ki = pl.program_id(2)

    @pl.when(ki == 0)
    def _():
        m_sc[...] = jnp.full_like(m_sc, -jnp.inf)
        l_sc[...] = jnp.zeros_like(l_sc)
        acc_sc[...] = jnp.zeros_like(acc_sc)

    theta = theta_ref[0]                                              # (tq, Cip) bf16
    pg = phig_ref[0]                                                  # (2*Cip, tk) bf16
    phi, g = pg[:cip], pg[cip:]
    s = jnp.dot(theta, phi, preferred_element_type=jnp.float32)       # (tq, tk)

    m_prev = m_sc[...]
    m_new = jnp.maximum(m_prev, jnp.max(s, axis=-1, keepdims=True))
    alpha = jnp.exp(m_prev - m_new)
    p = jnp.exp(s - m_new)
    l_sc[...] = alpha * l_sc[...] + jnp.sum(p, axis=-1, keepdims=True)
    acc_sc[...] = alpha * acc_sc[...] + lax.dot_general(
        p.astype(jnp.bfloat16), g, (((1,), (1,)), ((), ())),
        preferred_element_type=jnp.float32)
    m_sc[...] = m_new

    @pl.when(ki == pl.num_programs(2) - 1)
    def _():
        inv_l = pl.reciprocal(l_sc[...], approx=True)
        y = (acc_sc[...] * inv_l).astype(jnp.bfloat16)
        w_yt = lax.dot_general(ww_ref[...], y, (((1,), (1,)), ((), ())),
                               preferred_element_type=jnp.float32)    # (C, tq)
        o_ref[0] = x_ref[0] + w_yt + bw_ref[...]


# ------------------------------------- wrapper -----------------------------------------

def nonlocal_block(x_nchw, params, *, tm=None, tq=None, tk=None, kc=None,
                   force_mode=None):
    """x_nchw: (B, C, H, W) float32.  Returns (B, C, H, W) float32.

    force_mode: None (auto), "resident" (keys VMEM-resident, grid (B, nq)),
                or "flash" (tiled flash, grid (B, nq, nk)).
    """
    B, C, H, W = x_nchw.shape
    N = H * W
    Ci = params["wg"].shape[1]
    Cip = _round_up(Ci, 128)

    # Native layout: NCHW viewed as (B, C, N) — no transpose, no channel padding.
    x_flat = x_nchw.astype(jnp.float32).reshape(B, C, N)

    # Fold BatchNorm2d (inference mode, running stats) into the W 1x1 conv.
    # TODO(synk): training-mode BatchNorm (batch statistics of y) is not implemented.
    scale = params["bn_gamma"] / jnp.sqrt(params["bn_var"] + params["bn_eps"])
    ww_eff = params["ww"] * scale[None, :]                                    # (Ci, C)
    bw_eff = (params["bw"] - params["bn_mean"]) * scale + params["bn_beta"]   # (C,)

    def pad_rows_t(w):   # (C, Ci) -> (Cip, C): transpose + zero-pad output channels
        return jnp.pad(w.T, ((0, Cip - Ci), (0, 0)))

    def pad_vec(b):
        return jnp.pad(b, ((0, Cip - Ci),))

    # Fused projection weight: rows [0:Cip]=theta, [Cip:2Cip]=phi, [2Cip:3Cip]=g.
    w_qkv_t = jnp.concatenate([pad_rows_t(params["wt"]),
                               pad_rows_t(params["wp"]),
                               pad_rows_t(params["wg"])], axis=0).astype(jnp.bfloat16)
    b_qkv = jnp.concatenate([pad_vec(params["bt"]),
                             pad_vec(params["bp"]),
                             pad_vec(params["bg"])], axis=0
                            ).astype(jnp.float32).reshape(3 * Cip, 1)
    ww_t = jnp.pad(ww_eff.T, ((0, 0), (0, Cip - Ci))).astype(jnp.bfloat16)    # (C, Cip)
    bw_col = bw_eff.astype(jnp.float32).reshape(C, 1)

    # ---------------- tile selection (caps raised per perf review) ----------------
    if tm is None:
        tm = _pick_tile(N, 1024)
    if tq is None:
        tq = _pick_tile(N, 512)
        if B == 1 and tq == N:
            half = _pick_tile(N, max(128, N // 2))
            if half < N:
                tq = half   # keep >= 2 query tiles so both v7x TensorCores have work
    if tk is None:
        tk = _pick_tile(N, 512)
    if kc is None:
        kc = _pick_tile(N, 512)
    assert N % tm == 0 and N % tq == 0 and N % tk == 0 and N % kc == 0

    # ---------------- per-generation VMEM budget ----------------
    try:
        vmem_cap = int(getattr(pltpu.get_tpu_info(), "vmem_capacity_bytes",
                               64 * 1024 * 1024))
    except Exception:   # no TPU info -> assume the smallest (v7x, 64 MiB) VMEM
        vmem_cap = 64 * 1024 * 1024
    if vmem_cap >= 100 * 1024 * 1024:          # v5e / v6e: 128 MiB physical
        vmem_limit = 100 * 1024 * 1024
    else:                                      # v7x: 64 MiB per TensorCore
        vmem_limit = max(16 * 1024 * 1024, (vmem_cap * 5) // 8)

    # resident-keys decision: full-N [phi|g] block (default double-buffered, bf16)
    # plus the rest of the pass-2 working set must fit the VMEM budget.
    phig_resident = 2 * (N * 2 * Cip * 2)
    misc = (2 * tq * Cip * 2          # theta tile (double-buffered)
            + 2 * C * tq * 4          # residual x tile
            + 2 * C * tq * 4          # output tile
            + 2 * C * Cip * 2         # W weight
            + (Cip + 2) * tq * 4      # softmax scratch
            + 8 * 1024 * 1024)        # score/prob temporaries + headroom
    use_resident = (phig_resident + misc) <= vmem_limit
    if force_mode == "resident":
        use_resident = True
    elif force_mode == "flash":
        use_resident = False

    # ---------- pass 1: [theta | phi | g]^T = W_qkv^T @ x (+ bias), bf16 out ----------
    # TODO(synk): pipeline_mode=pl.Buffered(1) on the constant weight blocks would save
    # one VMEM buffer each; skipped to avoid lowering risk (budget assumes 2 buffers).
    theta_t, phig_t = pl.pallas_call(
        functools.partial(_qkv_proj_kernel, cip=Cip),
        out_shape=(jax.ShapeDtypeStruct((B, N, Cip), jnp.bfloat16),
                   jax.ShapeDtypeStruct((B, 2 * Cip, N), jnp.bfloat16)),
        grid_spec=pltpu.PrefetchScalarGridSpec(
            num_scalar_prefetch=0,
            grid=(B, N // tm),
            in_specs=[
                pl.BlockSpec((1, C, tm), lambda b, i: (b, 0, i)),       # x (NCHW view)
                pl.BlockSpec((3 * Cip, C), lambda b, i: (0, 0)),        # fused W_qkv^T
                pl.BlockSpec((3 * Cip, 1), lambda b, i: (0, 0)),        # fused bias
            ],
            out_specs=[
                pl.BlockSpec((1, tm, Cip), lambda b, i: (b, i, 0)),     # theta (query side)
                pl.BlockSpec((1, 2 * Cip, tm), lambda b, i: (b, 0, i)), # [phi|g] (key side)
            ],
        ),
        compiler_params=pltpu.CompilerParams(
            dimension_semantics=("parallel", "parallel"),
            vmem_limit_bytes=vmem_limit),
    )(x_flat, w_qkv_t, b_qkv)

    # ---------- pass 2: flash attention + W conv (BN folded) + residual ----------
    scratch = [
        pltpu.VMEM((tq, 1), jnp.float32),      # running max
        pltpu.VMEM((tq, 1), jnp.float32),      # running denom
        pltpu.VMEM((tq, Cip), jnp.float32),    # output accumulator
    ]

    if use_resident:
        out_flat = pl.pallas_call(
            functools.partial(_attn_resident_kernel, cip=Cip, kc=kc),
            out_shape=jax.ShapeDtypeStruct((B, C, N), jnp.float32),
            grid_spec=pltpu.PrefetchScalarGridSpec(
                num_scalar_prefetch=0,
                grid=(B, N // tq),
                in_specs=[
                    pl.BlockSpec((1, tq, Cip), lambda b, q: (b, q, 0)),     # theta
                    pl.BlockSpec((1, 2 * Cip, N), lambda b, q: (b, 0, 0)),  # [phi|g] resident
                    pl.BlockSpec((1, C, tq), lambda b, q: (b, 0, q)),       # residual x
                    pl.BlockSpec((C, Cip), lambda b, q: (0, 0)),            # W (BN folded)
                    pl.BlockSpec((C, 1), lambda b, q: (0, 0)),              # bias (BN folded)
                ],
                out_specs=pl.BlockSpec((1, C, tq), lambda b, q: (b, 0, q)),
                scratch_shapes=scratch,
            ),
            compiler_params=pltpu.CompilerParams(
                dimension_semantics=("parallel", "parallel"),
                vmem_limit_bytes=vmem_limit),
        )(theta_t, phig_t, x_flat, ww_t, bw_col)
    else:
        out_flat = pl.pallas_call(
            functools.partial(_attn_flash_kernel, cip=Cip),
            out_shape=jax.ShapeDtypeStruct((B, C, N), jnp.float32),
            grid_spec=pltpu.PrefetchScalarGridSpec(
                num_scalar_prefetch=0,
                grid=(B, N // tq, N // tk),
                in_specs=[
                    pl.BlockSpec((1, tq, Cip), lambda b, q, k: (b, q, 0)),      # theta
                    pl.BlockSpec((1, 2 * Cip, tk), lambda b, q, k: (b, 0, k)),  # [phi|g]
                    pl.BlockSpec((1, C, tq), lambda b, q, k: (b, 0, q)),        # residual x
                    pl.BlockSpec((C, Cip), lambda b, q, k: (0, 0)),             # W (BN folded)
                    pl.BlockSpec((C, 1), lambda b, q, k: (0, 0)),               # bias
                ],
                out_specs=pl.BlockSpec((1, C, tq), lambda b, q, k: (b, 0, q)),
                scratch_shapes=scratch,
            ),
            compiler_params=pltpu.CompilerParams(
                dimension_semantics=("parallel", "parallel", "arbitrary"),
                vmem_limit_bytes=vmem_limit),
        )(theta_t, phig_t, x_flat, ww_t, bw_col)

    # (B, C, N) is already NCHW channel-major layout — only a free reshape remains.
    return out_flat.reshape(B, C, H, W)


# ------------------------------ pure-JAX reference -------------------------------------

def reference_jax(x_nchw, params):
    """Pure-JAX f32 reference mirroring the PyTorch forward (BN in eval mode)."""
    B, C, H, W = x_nchw.shape
    N = H * W
    x_flat = jnp.transpose(x_nchw.reshape(B, C, N), (0, 2, 1))  # (B, N, C)

    g_x = jnp.einsum("bnc,ci->bni", x_flat, params["wg"]) + params["bg"]
    th = jnp.einsum("bnc,ci->bni", x_flat, params["wt"]) + params["bt"]
    ph = jnp.einsum("bnc,ci->bni", x_flat, params["wp"]) + params["bp"]
    f = jnp.einsum("bni,bmi->bnm", th, ph)
    p = jax.nn.softmax(f, axis=-1)
    y = jnp.einsum("bnm,bmi->bni", p, g_x)
    w_y = jnp.einsum("bni,ic->bnc", y, params["ww"]) + params["bw"]
    scale = params["bn_gamma"] / jnp.sqrt(params["bn_var"] + params["bn_eps"])
    w_y = (w_y - params["bn_mean"]) * scale + params["bn_beta"]
    out = x_flat + w_y
    return jnp.transpose(out, (0, 2, 1)).reshape(B, C, H, W)


def make_params(key, in_channels, inter_channels):
    ks = jax.random.split(key, 10)
    C, Ci = in_channels, inter_channels
    # PyTorch Conv2d(k=1) weights are (out, in, 1, 1); stored here already as (in, out).
    return {
        "wg": jax.random.normal(ks[0], (C, Ci), jnp.float32) * 0.1,
        "bg": jax.random.normal(ks[1], (Ci,), jnp.float32) * 0.1,
        "wt": jax.random.normal(ks[2], (C, Ci), jnp.float32) * 0.1,
        "bt": jax.random.normal(ks[3], (Ci,), jnp.float32) * 0.1,
        "wp": jax.random.normal(ks[4], (C, Ci), jnp.float32) * 0.1,
        "bp": jax.random.normal(ks[5], (Ci,), jnp.float32) * 0.1,
        "ww": jax.random.normal(ks[6], (Ci, C), jnp.float32) * 0.1,
        "bw": jax.random.normal(ks[7], (C,), jnp.float32) * 0.1,
        "bn_gamma": 1.0 + 0.1 * jax.random.normal(ks[8], (C,), jnp.float32),
        "bn_beta": 0.1 * jax.random.normal(ks[9], (C,), jnp.float32),
        "bn_mean": jnp.zeros((C,), jnp.float32),
        "bn_var": jnp.ones((C,), jnp.float32),
        "bn_eps": jnp.float32(1e-5),
    }


if __name__ == "__main__":
    key = jax.random.PRNGKey(0)
    k_x, k_p = jax.random.split(key)

    B, C, H, W = 2, 4, 16, 16
    Ci = C // 2
    x = jax.random.normal(k_x, (B, C, H, W), jnp.float32)
    params = make_params(k_p, C, Ci)

    ref = reference_jax(x, params)

    # (1) auto config: resident-keys path (N=256 keys easily fit VMEM), single chunk
    out_auto = jax.block_until_ready(nonlocal_block(x, params))
    # (2) resident-keys path with 2 query tiles and 2 in-kernel key chunks
    out_res = jax.block_until_ready(
        nonlocal_block(x, params, tq=128, kc=128, force_mode="resident"))
    # (3) tiled flash fallback: 2 query tiles x 2 key tiles per batch
    out_flash = jax.block_until_ready(
        nonlocal_block(x, params, tq=128, tk=128, force_mode="flash"))

    # bf16 MXU inputs + approx reciprocal -> compare with modest tolerance vs f32 ref
    for name, out in (("auto", out_auto), ("resident", out_res), ("flash", out_flash)):
        assert out.shape == (B, C, H, W)
        assert jnp.allclose(out, ref, atol=1e-2, rtol=1e-2), f"{name} mismatch vs reference"

    print("KERNEL_OK")
</pallas_src>

<mosaic_0001>
module attributes {stable_mosaic.version = 11 : i64} {
  func.func @_qkv_proj_kernel(%arg0: i32, %arg1: i32, %arg2: memref<1x4x256xf32, #tpu.memory_space<vmem>>, %arg3: memref<384x4xbf16, #tpu.memory_space<vmem>>, %arg4: memref<384x1xf32, #tpu.memory_space<vmem>>, %arg5: memref<1x256x128xbf16, #tpu.memory_space<vmem>>, %arg6: memref<1x256x256xbf16, #tpu.memory_space<vmem>>) attributes {dimension_semantics = [#tpu.dimension_semantics<parallel>, #tpu.dimension_semantics<parallel>], iteration_bounds = array<i64: 2, 1>, scalar_prefetch = 0 : i64, scratch_operands = 0 : i64, tpu.core_type = #tpu.core_type<tc>, window_params = [{transform_indices = @transform_0, window_bounds = array<i64: 1, 4, 256>}, {pipeline_mode = #tpu.pipeline_mode<synchronous>, transform_indices = @transform_1, window_bounds = array<i64: 384, 4>}, {pipeline_mode = #tpu.pipeline_mode<synchronous>, transform_indices = @transform_2, window_bounds = array<i64: 384, 1>}, {transform_indices = @transform_3, window_bounds = array<i64: 1, 256, 128>}, {transform_indices = @transform_4, window_bounds = array<i64: 1, 256, 256>}]} {
    %c0 = arith.constant 0 : index
    %c0_0 = arith.constant 0 : index
    %c0_1 = arith.constant 0 : index
    %0 = vector.load %arg2[%c0, %c0_0, %c0_1] : memref<1x4x256xf32, #tpu.memory_space<vmem>>, vector<1x4x256xf32>
    %1 = vector.shape_cast %0 : vector<1x4x256xf32> to vector<4x256xf32>
    %2 = arith.truncf %1 : vector<4x256xf32> to vector<4x256xbf16>
    %c0_2 = arith.constant 0 : index
    %c0_3 = arith.constant 0 : index
    %3 = vector.load %arg3[%c0_2, %c0_3] : memref<384x4xbf16, #tpu.memory_space<vmem>>, vector<384x4xbf16>
    %cst = arith.constant dense<0.000000e+00> : vector<384x256xf32>
    %4 = tpu.matmul %3, %2, %cst {dimension_numbers = #tpu.dot_dimension_numbers<[1], [0], [0], [1], [0, 0, 1, 1], [], []>} : vector<384x4xbf16>, vector<4x256xbf16>, vector<384x256xf32> -> vector<384x256xf32>
    %c0_4 = arith.constant 0 : index
    %c0_5 = arith.constant 0 : index
    %5 = vector.load %arg4[%c0_4, %c0_5] : memref<384x1xf32, #tpu.memory_space<vmem>>, vector<384x1xf32>
    %6 = vector.broadcast %5 : vector<384x1xf32> to vector<384x256xf32>
    %7 = arith.addf %4, %6 : vector<384x256xf32>
    %8 = vector.extract_strided_slice %7 {offsets = [0, 0], sizes = [128, 256], strides = [1, 1]} : vector<384x256xf32> to vector<128x256xf32>
    %9 = tpu.transpose %8, [1, 0] : vector<128x256xf32> -> vector<256x128xf32>
    %10 = arith.truncf %9 : vector<256x128xf32> to vector<256x128xbf16>
    %c0_6 = arith.constant 0 : index
    %c0_7 = arith.constant 0 : index
    %c0_8 = arith.constant 0 : index
    %11 = vector.load %arg5[%c0_6, %c0_7, %c0_8] : memref<1x256x128xbf16, #tpu.memory_space<vmem>>, vector<1x256x128xbf16>
    %12 = vector.shape_cast %11 : vector<1x256x128xbf16> to vector<256x128xbf16>
    %13 = vector.shape_cast %10 : vector<256x128xbf16> to vector<1x256x128xbf16>
    tpu.vector_store %arg5[%c0_6, %c0_7, %c0_8], %13 {strides = array<i32>} : memref<1x256x128xbf16, #tpu.memory_space<vmem>>, vector<1x256x128xbf16>,
    %14 = vector.extract_strided_slice %7 {offsets = [128, 0], sizes = [256, 256], strides = [1, 1]} : vector<384x256xf32> to vector<256x256xf32>
    %15 = arith.truncf %14 : vector<256x256xf32> to vector<256x256xbf16>
    %c0_9 = arith.constant 0 : index
    %c0_10 = arith.constant 0 : index
    %c0_11 = arith.constant 0 : index
    %16 = vector.load %arg6[%c0_9, %c0_10, %c0_11] : memref<1x256x256xbf16, #tpu.memory_space<vmem>>, vector<1x256x256xbf16>
    %17 = vector.shape_cast %16 : vector<1x256x256xbf16> to vector<256x256xbf16>
    %18 = vector.shape_cast %15 : vector<256x256xbf16> to vector<1x256x256xbf16>
    tpu.vector_store %arg6[%c0_9, %c0_10, %c0_11], %18 {strides = array<i32>} : memref<1x256x256xbf16, #tpu.memory_space<vmem>>, vector<1x256x256xbf16>,
    return
  }
  func.func @transform_0(%arg0: i32, %arg1: i32) -> (i32, i32, i32) {
    %c0_i32 = arith.constant 0 : i32
    %c0_i32_0 = arith.constant 0 : i32
    return %arg0, %c0_i32, %arg1 : i32, i32, i32
  }
  func.func @transform_1(%arg0: i32, %arg1: i32) -> (i32, i32) {
    %c0_i32 = arith.constant 0 : i32
    %c0_i32_0 = arith.constant 0 : i32
    %c0_i32_1 = arith.constant 0 : i32
    return %c0_i32, %c0_i32_0 : i32, i32
  }
  func.func @transform_2(%arg0: i32, %arg1: i32) -> (i32, i32) {
    %c0_i32 = arith.constant 0 : i32
    %c0_i32_0 = arith.constant 0 : i32
    %c0_i32_1 = arith.constant 0 : i32
    return %c0_i32, %c0_i32_0 : i32, i32
  }
  func.func @transform_3(%arg0: i32, %arg1: i32) -> (i32, i32, i32) {
    %c0_i32 = arith.constant 0 : i32
    %c0_i32_0 = arith.constant 0 : i32
    return %arg0, %arg1, %c0_i32 : i32, i32, i32
  }
  func.func @transform_4(%arg0: i32, %arg1: i32) -> (i32, i32, i32) {
    %c0_i32 = arith.constant 0 : i32
    %c0_i32_0 = arith.constant 0 : i32
    return %arg0, %c0_i32, %arg1 : i32, i32, i32
  }
}

</mosaic_0001>

<bundles_post_ra>
// kernel: tpu_custom_call.1
= control target key start
LH: loop header
LB: loop body
LE: loop exit
PB: predicated region body
PF: predicated region fallthrough
CT: control target
= control target key end

     0   :  { %10 = vsyncpa [#allocation3], 0  ;;  %s2849_s0 = inlined_call_operand.vmem [shape: f32[2,4,256], index: 0, kind: input, shape index: {}]   ;;  %s2850_s1 = inlined_call_operand.vmem [shape: bf16[384,4], index: 1, kind: input, shape index: {}]   ;;  %s2851_s2 = inlined_call_operand.vmem [shape: f32[384,1], index: 2, kind: input, shape index: {}]   ;;  %s2852_s3 = inlined_call_operand.hbm [shape: bf16[2,256,128], index: 3, kind: output, shape index: {0}]   ;;  %s2853_s4 = inlined_call_operand.hbm [shape: bf16[2,256,256], index: 4, kind: output, shape index: {1}]  }
   0x1   :  { %12 = vsyncpa [#allocation3 + $0x1], 0 }
   0x2   :  { %13 = vsyncpa [#allocation5], 0 }
   0x3   :  { %15 = vsyncpa [#allocation5 + $0x1], 0  ;;  %s2296_s15 = smov 0   ;;  %s2298_s16 = smov 0  }
   0x4   :  { %s2300_s17 = smov 0   ;;  %s2302_s18 = smov 0  }
   0x5   :  { %s2304_s19 = smov 0   ;;  %s2306_s20 = smov 0  }
   0x6 LB: > { %s1658_s21 = sadd.s32 4294967295, %s2262_s20   ;;  %s1659_s22 = sadd.s32 4294967294, %s2262_s20   ;;  %s2262_s20 = sphi %s2306_s20, %s21_s20   ;;  %s2258_s19 = sphi %s2304_s19, %s2860_s19   ;;  %s2254_s18 = sphi %s2302_s18, %s2859_s18   ;;  %s2250_s17 = sphi %s2300_s17, %s2858_s17   ;;  %s2246_s16 = sphi %s2298_s16, %s2857_s16   ;;  %s2242_s15 = sphi %s2296_s15, %s2856_s15  }
   0x7   : > { %s33_s23 = sadd.s32 1, %s2258_s19  ;;  %s112_s24 = sadd.s32 1, %s2250_s17 }
   0x8   : > { %p35_p0 = scmp.ge.s32.totalorder %s33_s23, 2  ;;  %p122_p1 = scmp.ne.s32.totalorder %s2250_s17, %s2246_s16 }
   0x9   : > { %p123_p2 = scmp.eq.s32.totalorder %s1658_s21, 1  ;;  %p128_p3 = scmp.ne.s32.totalorder %s2246_s16, %s2242_s15 }
   0xa   : > { %s2862_s23 = smov (%p35_p0, %s33_s23), 0  ;;  %p129_p5 = scmp.eq.s32.totalorder %s1659_s22, 1 }
   0xb   : > { %p2336_p4 = por %p123_p2, %p122_p1  ;;  %s107_s26 = ssub.s32 %s2258_s19, %s2862_s23 }
   0xc   : > { %p1662_p6 = scmp.ge.s32.totalorder %s2262_s20, 1  ;;  %p110_p7 = scmp.eq.s32.totalorder %s107_s26, 0 }
   0xd   : > { %p2343_p8 = por %p129_p5, %p128_p3  ;;  %p194_p9 = scmp.lt.s32.totalorder %s2262_s20, 3 }
   0xe   : > { %s2349_s28 = scalar_select %p110_p7, %s2250_s17, %s112_s24  }
   0xf   : > { %p195_p10 = pnand %p1662_p6, %p194_p9 }
  0x10   : > { %p230_p11 = scmp.lt.s32.totalorder (!%p195_p10), %s2254_s18, 1  ;;  %s2665_s8 = sand.u32 (!%p195_p10), 1, %s2246_s16  }
  0x11   : > { %198 = sbr.rel (%p195_p10) target bundleno = 439 (0x1b7), region = 32  ;;  %s1854_s11 = sshll.u32 (!%p195_p10), %s2254_s18, 12 }
  0x12   : > { %s2747_s21 = scalar_lea.hbm (!%p195_p10), %s2853_s4, %s1854_s11  ;;  %s1511_s22 = scalar_lea.sflag (!%p195_p10), [#allocation5], %s2665_s8 }
  0x13   : > { %s2265_s26 = smov (!%p195_p10), [#allocation4]  }
  0x14   : > { %s2160_s29 = sshll.u32 (!%p195_p10), %s2265_s26, 4  ;;  %s2161_s29 = int_to_ptr.vmem [resolvable:$false] %s2160_s29 }
  0x15   : > { %s2162_s30 = scalar_lea.vmem (!%p195_p10), %s2161_s29, 8192 }
  0x16   : > { %v298_v0 = vld [vmem:[%s2851_s2 + $0x10] sm:$0xff]  ;;  %v296_v1 = vld [vmem:[%s2851_s2] sm:$0xff]  ;;  %v2264_v2 = vmov 0   ;;  %v299_v3 = vld [vmem:[%s2851_s2 + $0x18] sm:$0xff]  ;;  %s231_s9 = scalar_select %p230_p11, %s2254_s18, 1  ;;  %vm777_vm0 = vcmask 1041408  }
  0x17   : > { %2018 = vset.pattern.permute.xlu1 %v2264_v2  ;;  %2017 = vset.pattern.permute.xlu0 %v2264_v2  ;;  %v297_v4 = vld [vmem:[%s2851_s2 + $0x8] sm:$0xff]  ;;  %v300_v7 = vld [vmem:[%s2851_s2 + $0x20] sm:$0xff]  ;;  %v303_v12 = vld [vmem:[%s2851_s2 + $0x38] sm:$0xff]  ;;  %vm704_vm1 = vcmask 31744  }
  0x18   : > { %356 = vperm.xlu1 %2018, %v298_v0   ;;  %346 = vperm.xlu0 %2017, %v296_v1   ;;  %s1788_s12 = sshll.u32 %s231_s9, 3  ;;  %v301_v5 = vld [vmem:[%s2851_s2 + $0x28] sm:$0xff]  ;;  %v302_v13 = vld [vmem:[%s2851_s2 + $0x30] sm:$0xff]  ;;  %v2132_v14 = vld [vmem:[%s2850_s1] sm:$0xff]   ;;  %s1664_s9 = sshll.u32 %s2665_s8, 8 }
  0x19   : > { %816 = vmatprep.mubr.bf16.mxu0 %v2264_v2  ;;  %936 = vmatprep.mubr.bf16.mxu1 %v2264_v2  ;;  %s237_s24 = scalar_lea.vmem %s2849_s0, %s1788_s12  ;;  %v2133_v15 = vld [vmem:[%s2850_s1 + $0x60] sm:$0xff]   ;;  %v305_v16 = vld [vmem:[%s2851_s2 + $0x48] sm:$0xff]  ;;  %v307_v18 = vld [vmem:[%s2851_s2 + $0x58] sm:$0xff]  ;;  %s2668_s10 = scalar_lea.vmem [#allocation4], %s1664_s9 }
  0x1a   : > { %v242_v6 = vld [vmem:[%s237_s24] sm:$0xff]  ;;  %v306_v19 = vld [vmem:[%s2851_s2 + $0x50] sm:$0xff]  ;;  %v2134_v20 = vld [vmem:[%s2850_s1 + $0x8] sm:$0xff]   ;;  %s1544_s12 = sshll.u32 %s2668_s10, 4  ;;  %s2749_s12 = int_to_ptr.vmem [resolvable:$true] %s1544_s12 }
  0x1b   : > { %v244_v8 = vcombine.high %v242_v6, %v242_v6  ;;  %v246_v9 = vpack.c.bf16 %v242_v6, %v242_v6  ;;  %v304_v17 = vld [vmem:[%s2851_s2 + $0x40] sm:$0xff]  ;;  %v2135_v21 = vld [vmem:[%s2850_s1 + $0x68] sm:$0xff]   ;;  %v311_v24 = vld [vmem:[%s2851_s2 + $0x78] sm:$0xff]  ;;  %s2156_s24 = scalar_lea.vmem %s2749_s12, 4096  ;;  %p2163_p1 = scmp.lt.s32.totalorder %s2749_s12, %s2161_s29 }
  0x1c   : > { %361 = vperm.xlu1 %2018, %v299_v3   ;;  %351 = vperm.xlu0 %2017, %v297_v4   ;;  %v309_v22 = vld [vmem:[%s2851_s2 + $0x68] sm:$0xff]  ;;  %v308_v23 = vld [vmem:[%s2851_s2 + $0x60] sm:$0xff]  ;;  %v310_v25 = vld [vmem:[%s2851_s2 + $0x70] sm:$0xff]  ;;  %p2157_p12 = scmp.ne.s32.totalorder %s2749_s12, %s2156_s24  ;;  %p2164_p2 = scmp.lt.s32.totalorder %s2162_s30, %s2156_s24 }
  0x1d   : > { %v247_v10 = vpack.c.bf16 %v244_v8, %v244_v8  ;;  %v779_v11 = vsel %vm777_vm0, %v246_v9, 0  ;;  %v2136_v26 = vld [vmem:[%s2850_s1 + $0x10] sm:$0xff]   ;;  %v313_v28 = vld [vmem:[%s2851_s2 + $0x88] sm:$0xff]  ;;  %v312_v29 = vld [vmem:[%s2851_s2 + $0x80] sm:$0xff] }
  0x1e   : > { %v2137_v27 = vld [vmem:[%s2850_s1 + $0x70] sm:$0xff]   ;;  %v315_v30 = vld [vmem:[%s2851_s2 + $0x98] sm:$0xff]  ;;  %v317_v34 = vld [vmem:[%s2851_s2 + $0xa8] sm:$0xff]  ;;  %p2158_p13 = pnand %p2157_p12, %p2336_p4  ;;  %p2165_p3 = por %p2164_p2, %p2163_p1 }
  0x1f   : > { %1691 = vmatprep.subr.msk.bf16.mxu0 %vm777_vm0, %v247_v10  ;;  %1950 = vmatprep.subr.msk.bf16.mxu1 %vm777_vm0, %v247_v10  ;;  %v314_v31 = vld [vmem:[%s2851_s2 + $0x90] sm:$0xff]  ;;  %v2138_v32 = vld [vmem:[%s2850_s1 + $0x18] sm:$0xff]   ;;  %v316_v35 = vld [vmem:[%s2851_s2 + $0xa0] sm:$0xff] }
  0x20   : > { %371 = vperm.xlu1 %2018, %v301_v5   ;;  %366 = vperm.xlu0 %2017, %v300_v7   ;;  %v2139_v33 = vld [vmem:[%s2850_s1 + $0x78] sm:$0xff]   ;;  %v318_v37 = vld [vmem:[%s2851_s2 + $0xb0] sm:$0xff]  ;;  %v2140_v38 = vld [vmem:[%s2850_s1 + $0x20] sm:$0xff]   ;;  %p2159_p0 = pneg %p2158_p13 }
  0x21   : > { %799 = vmatpush1.bf16.msra.mxu0 %v779_v11  ;;  %1951 = vmatpush1.bf16.msra.mxu1 %v779_v11  ;;  %v319_v36 = vld [vmem:[%s2851_s2 + $0xb8] sm:$0xff]  ;;  %v2141_v39 = vld [vmem:[%s2850_s1 + $0x80] sm:$0xff]   ;;  %v321_v40 = vld [vmem:[%s2851_s2 + $0xc8] sm:$0xff] }
  0x22   : > { %v320_v41 = vld [vmem:[%s2851_s2 + $0xc0] sm:$0xff]  ;;  %v323_v42 = vld [vmem:[%s2851_s2 + $0xd8] sm:$0xff]  ;;  %v322_v43 = vld [vmem:[%s2851_s2 + $0xd0] sm:$0xff]  ;;  %p2166_p5 = pnand %p2165_p3, %p2159_p0 }
  0x23   : > { %v2142_v44 = vld [vmem:[%s2850_s1 + $0x28] sm:$0xff]   ;;  %v324_v47 = vld [vmem:[%s2851_s2 + $0xe0] sm:$0xff]  ;;  %v327_v48 = vld [vmem:[%s2851_s2 + $0xf8] sm:$0xff] }
  0x24   : > { %381 = vperm.xlu1 %2018, %v303_v12   ;;  %376 = vperm.xlu0 %2017, %v302_v13   ;;  %v2143_v45 = vld [vmem:[%s2850_s1 + $0x88] sm:$0xff]   ;;  %v326_v49 = vld [vmem:[%s2851_s2 + $0xf0] sm:$0xff]  ;;  %v328_v53 = vld [vmem:[%s2851_s2 + $0x100] sm:$0xff] }
  0x25   : > { %1692 = vmatmul.mubr.msk.bf16.vlgmr.msra.gmra.mxu0 %vm704_vm1, %v2132_v14  ;;  %1704 = vmatmul.mubr.msk.bf16.vlgmr.msra.gmra.mxu1 %vm704_vm1, %v2133_v15  ;;  %v325_v46 = vld [vmem:[%s2851_s2 + $0xe8] sm:$0xff]  ;;  %v2144_v50 = vld [vmem:[%s2850_s1 + $0x30] sm:$0xff]   ;;  %v331_v54 = vld [vmem:[%s2851_s2 + $0x118] sm:$0xff] }
  0x26   : > { %826 = vmatprep.mubr.bf16.mxu0 %v2264_v2  ;;  %946 = vmatprep.mubr.bf16.mxu1 %v2264_v2  ;;  %v2145_v51 = vld [vmem:[%s2850_s1 + $0x90] sm:$0xff]   ;;  %v329_v52 = vld [vmem:[%s2851_s2 + $0x108] sm:$0xff]  ;;  %v2146_v56 = vld [vmem:[%s2850_s1 + $0x38] sm:$0xff]  }
  0x27   : > { %v330_v55 = vld [vmem:[%s2851_s2 + $0x110] sm:$0xff]  ;;  %v2147_v57 = vld [vmem:[%s2850_s1 + $0x98] sm:$0xff]   ;;  %v333_v58 = vld [vmem:[%s2851_s2 + $0x128] sm:$0xff] }
  0x28   : > { %391 = vperm.xlu1 %2018, %v305_v16   ;;  %386 = vperm.xlu0 %2017, %v304_v17   ;;  %v332_v59 = vld [vmem:[%s2851_s2 + $0x120] sm:$0xff]  ;;  %v335_v60 = vld [vmem:[%s2851_s2 + $0x138] sm:$0xff]  ;;  %v334_v61 = vld [vmem:[%s2851_s2 + $0x130] sm:$0xff] }
  0x29   : > { %v2148_v62 = vld [vmem:[%s2850_s1 + $0x40] sm:$0xff]   ;;  %v337_v0 = vld [vmem:[%s2851_s2 + $0x148] sm:$0xff]  ;;  %v339_v3 = vld [vmem:[%s2851_s2 + $0x158] sm:$0xff] }
  0x2a   : > { %v2149_v63 = vld [vmem:[%s2850_s1 + $0xa0] sm:$0xff]   ;;  %v338_v4 = vld [vmem:[%s2851_s2 + $0x150] sm:$0xff]  ;;  %v2150_v5 = vld [vmem:[%s2850_s1 + $0x48] sm:$0xff]  }
  0x2b   : > { %v336_v1 = vld [vmem:[%s2851_s2 + $0x140] sm:$0xff]  ;;  %v2151_v6 = vld [vmem:[%s2850_s1 + $0xa8] sm:$0xff]   ;;  %v343_v9 = vld [vmem:[%s2851_s2 + $0x178] sm:$0xff] }
  0x2c   : > { %401 = vperm.xlu1 %2018, %v307_v18   ;;  %396 = vperm.xlu0 %2017, %v306_v19   ;;  %v341_v7 = vld [vmem:[%s2851_s2 + $0x168] sm:$0xff]  ;;  %v340_v8 = vld [vmem:[%s2851_s2 + $0x160] sm:$0xff]  ;;  %v342_v10 = vld [vmem:[%s2851_s2 + $0x170] sm:$0xff] }
  0x2d   : > { %1693 = vmatmul.mubr.msk.bf16.gmra.mxu0 %vm704_vm1, %v2134_v20  ;;  %1705 = vmatmul.mubr.msk.bf16.gmra.mxu1 %vm704_vm1, %v2135_v21  ;;  %v2152_v11 = vld [vmem:[%s2850_s1 + $0x50] sm:$0xff]   ;;  %v2154_v13 = vld [vmem:[%s2850_s1 + $0x58] sm:$0xff]  }
  0x2e   : > { %836 = vmatprep.mubr.bf16.mxu0 %v2264_v2  ;;  %956 = vmatprep.mubr.bf16.mxu1 %v2264_v2  ;;  %v2153_v12 = vld [vmem:[%s2850_s1 + $0xb0] sm:$0xff]   ;;  %v2155_v14 = vld [vmem:[%s2850_s1 + $0xb8] sm:$0xff]  }
  0x30   : > { %411 = vperm.xlu1 %2018, %v309_v22   ;;  %406 = vperm.xlu0 %2017, %v308_v23  }
  0x34   : > { %421 = vperm.xlu1 %2018, %v311_v24   ;;  %416 = vperm.xlu0 %2017, %v310_v25  }
  0x35   : > { %1694 = vmatmul.mubr.msk.bf16.gmra.mxu0 %vm704_vm1, %v2136_v26  ;;  %1706 = vmatmul.mubr.msk.bf16.gmra.mxu1 %vm704_vm1, %v2137_v27 }
  0x36   : > { %846 = vmatprep.mubr.bf16.mxu0 %v2264_v2  ;;  %966 = vmatprep.mubr.bf16.mxu1 %v2264_v2 }
  0x38   : > { %431 = vperm.xlu1 %2018, %v313_v28   ;;  %426 = vperm.xlu0 %2017, %v312_v29  }
  0x3c   : > { %441 = vperm.xlu1 %2018, %v315_v30   ;;  %436 = vperm.xlu0 %2017, %v314_v31  }
  0x3d   : > { %1695 = vmatmul.mubr.msk.bf16.gmra.mxu0 %vm704_vm1, %v2138_v32  ;;  %1707 = vmatmul.mubr.msk.bf16.gmra.mxu1 %vm704_vm1, %v2139_v33 }
  0x3e   : > { %856 = vmatprep.mubr.bf16.mxu0 %v2264_v2  ;;  %976 = vmatprep.mubr.bf16.mxu1 %v2264_v2 }
  0x40   : > { %451 = vperm.xlu1 %2018, %v317_v34   ;;  %446 = vperm.xlu0 %2017, %v316_v35  }
  0x44   : > { %461 = vperm.xlu1 %2018, %v319_v36   ;;  %456 = vperm.xlu0 %2017, %v318_v37  }
  0x45   : > { %1696 = vmatmul.mubr.msk.bf16.gmra.mxu0 %vm704_vm1, %v2140_v38  ;;  %1708 = vmatmul.mubr.msk.bf16.gmra.mxu1 %vm704_vm1, %v2141_v39 }
  0x46   : > { %866 = vmatprep.mubr.bf16.mxu0 %v2264_v2  ;;  %986 = vmatprep.mubr.bf16.mxu1 %v2264_v2 }
  0x48   : > { %471 = vperm.xlu1 %2018, %v321_v40   ;;  %466 = vperm.xlu0 %2017, %v320_v41  }
  0x4c   : > { %481 = vperm.xlu1 %2018, %v323_v42   ;;  %476 = vperm.xlu0 %2017, %v322_v43  }
  0x4d   : > { %1697 = vmatmul.mubr.msk.bf16.gmra.mxu0 %vm704_vm1, %v2142_v44  ;;  %1709 = vmatmul.mubr.msk.bf16.gmra.mxu1 %vm704_vm1, %v2143_v45 }
  0x4e   : > { %876 = vmatprep.mubr.bf16.mxu0 %v2264_v2  ;;  %996 = vmatprep.mubr.bf16.mxu1 %v2264_v2 }
  0x50   : > { %491 = vperm.xlu1 %2018, %v325_v46   ;;  %486 = vperm.xlu0 %2017, %v324_v47  }
  0x54   : > { %501 = vperm.xlu1 %2018, %v327_v48   ;;  %496 = vperm.xlu0 %2017, %v326_v49  }
  0x55   : > { %1698 = vmatmul.mubr.msk.bf16.gmra.mxu0 %vm704_vm1, %v2144_v50  ;;  %1710 = vmatmul.mubr.msk.bf16.gmra.mxu1 %vm704_vm1, %v2145_v51 }
  0x56   : > { %886 = vmatprep.mubr.bf16.mxu0 %v2264_v2  ;;  %1006 = vmatprep.mubr.bf16.mxu1 %v2264_v2 }
  0x58   : > { %511 = vperm.xlu1 %2018, %v329_v52   ;;  %506 = vperm.xlu0 %2017, %v328_v53  }
  0x5c   : > { %521 = vperm.xlu1 %2018, %v331_v54   ;;  %516 = vperm.xlu0 %2017, %v330_v55  }
  0x5d   : > { %1699 = vmatmul.mubr.msk.bf16.gmra.mxu0 %vm704_vm1, %v2146_v56  ;;  %1711 = vmatmul.mubr.msk.bf16.gmra.mxu1 %vm704_vm1, %v2147_v57 }
  0x5e   : > { %896 = vmatprep.mubr.bf16.mxu0 %v2264_v2  ;;  %1016 = vmatprep.mubr.bf16.mxu1 %v2264_v2 }
  0x60   : > { %531 = vperm.xlu1 %2018, %v333_v58   ;;  %526 = vperm.xlu0 %2017, %v332_v59  }
  0x64   : > { %541 = vperm.xlu1 %2018, %v335_v60   ;;  %536 = vperm.xlu0 %2017, %v334_v61  }
  0x65   : > { %1700 = vmatmul.mubr.msk.bf16.gmra.mxu0 %vm704_vm1, %v2148_v62  ;;  %1712 = vmatmul.mubr.msk.bf16.gmra.mxu1 %vm704_vm1, %v2149_v63 }
  0x66   : > { %906 = vmatprep.mubr.bf16.mxu0 %v2264_v2  ;;  %1026 = vmatprep.mubr.bf16.mxu1 %v2264_v2 }
  0x68   : > { %551 = vperm.xlu1 %2018, %v337_v0   ;;  %546 = vperm.xlu0 %2017, %v336_v1  }
  0x6c   : > { %561 = vperm.xlu1 %2018, %v339_v3   ;;  %556 = vperm.xlu0 %2017, %v338_v4  }
  0x6d   : > { %1701 = vmatmul.mubr.msk.bf16.gmra.mxu0 %vm704_vm1, %v2150_v5  ;;  %1713 = vmatmul.mubr.msk.bf16.gmra.mxu1 %vm704_vm1, %v2151_v6 }
  0x6e   : > { %916 = vmatprep.mubr.bf16.mxu0 %v2264_v2  ;;  %1036 = vmatprep.mubr.bf16.mxu1 %v2264_v2 }
  0x70   : > { %571 = vperm.xlu1 %2018, %v341_v7   ;;  %566 = vperm.xlu0 %2017, %v340_v8  }
  0x74   : > { %581 = vperm.xlu1 %2018, %v343_v9   ;;  %576 = vperm.xlu0 %2017, %v342_v10  }
  0x75   : > { %1702 = vmatmul.mubr.msk.bf16.gmra.mxu0 %vm704_vm1, %v2152_v11  ;;  %1714 = vmatmul.mubr.msk.bf16.gmra.mxu1 %vm704_vm1, %v2153_v12 }
  0x76   : > { %926 = vmatprep.mubr.bf16.mxu0 %v2264_v2  ;;  %1046 = vmatprep.mubr.bf16.mxu1 %v2264_v2 }
  0x7d   : > { %1703 = vmatmul.mubr.msk.bf16.gmra.mxu0 %vm704_vm1, %v2154_v13  ;;  %1715 = vmatmul.mubr.msk.bf16.gmra.mxu1 %vm704_vm1, %v2155_v14 }
  0x93   : > { %v347_v15 = vpop.permute.xlu0 %346  ;;  %v357_v16 = vpop.permute.xlu1 %356 }
  0x97   : > { %v352_v17 = vpop.permute.xlu0 %351  ;;  %v2622_v18 = vpop.permute.xlu1 %361 }
  0x9b   : > { %v2624_v19 = vpop.permute.xlu0 %366  ;;  %v2626_v2 = vpop.permute.xlu1 %371 }
  0x9f   : > { %v2628_v20 = vpop.permute.xlu0 %376  ;;  %v2630_v21 = vpop.permute.xlu1 %381 }
  0xa3   : > { %v2632_v22 = vpop.permute.xlu0 %386  ;;  %v2634_v23 = vpop.permute.xlu1 %391 }
  0xa7   : > { %v2636_v24 = vpop.permute.xlu0 %396  ;;  %v2638_v25 = vpop.permute.xlu1 %401 }
  0xab   : > { %v2640_v26 = vpop.permute.xlu0 %406  ;;  %v2642_v27 = vpop.permute.xlu1 %411 }
  0xaf   : > { %v2644_v28 = vpop.permute.xlu0 %416  ;;  %v2646_v29 = vpop.permute.xlu1 %421 }
  0xb3   : > { %v2648_v30 = vpop.permute.xlu0 %426  ;;  %v2650_v31 = vpop.permute.xlu1 %431 }
  0xb7   : > { %v2652_v32 = vpop.permute.xlu0 %436  ;;  %v2654_v33 = vpop.permute.xlu1 %441 }
  0xbb   : > { %v2656_v34 = vpop.permute.xlu0 %446  ;;  %v2658_v35 = vpop.permute.xlu1 %451 }
  0xbf   : > { %v2660_v36 = vpop.permute.xlu0 %456  ;;  %v2662_v37 = vpop.permute.xlu1 %461 }
  0xc3   : > { %v467_v40 = vpop.permute.xlu0 %466  ;;  %v472_v44 = vpop.permute.xlu1 %471 }
  0xc7   : > { %v477_v60 = vpop.permute.xlu0 %476  ;;  %v482_v8 = vpop.permute.xlu1 %481 }
  0xe5   : > { %v818_v38 = vpop.f32.mrf.mxu0  ;;  %v938_v39 = vpop.f32.mrf.mxu1 }
  0xe6   : > { %v939_v41 = vadd.f32 %v938_v39, %v467_v40  ;;  %v819_v45 = vadd.f32 %v818_v38, %v347_v15  ;;  %v487_v39 = vpop.permute.xlu0 %486 }
  0xe7   : > { %v820_v42 = vpop.f32.mrf.mxu0  ;;  %v940_v43 = vpop.f32.mrf.mxu1 }
  0xe8   : > { %v821_v46 = vadd.f32 %v820_v42, %v347_v15  ;;  %v941_v47 = vadd.f32 %v940_v43, %v467_v40 }
  0xe9   : > { %v822_v48 = vpop.f32.mrf.mxu0  ;;  %v942_v49 = vpop.f32.mrf.mxu1 }
  0xea   : > { %v2019_v50 = vpack.i.bf16 %v821_v46, %v819_v45  ;;  %v1829_v51 = vpack.c.bf16 %v941_v47, %v939_v41  ;;  %v943_v52 = vadd.f32 %v942_v49, %v472_v44  ;;  %v823_v55 = vadd.f32 %v822_v48, %v352_v17  ;;  %v492_v49 = vpop.permute.xlu1 %491 }
  0xeb   : > { %v824_v53 = vpop.f32.mrf.mxu0  ;;  %v944_v54 = vpop.f32.mrf.mxu1 }
  0xec   : > { %1481 = vst [vmem:[%s2668_s10 + $0x40] sm:$0xff] %v1829_v51  ;;  %v825_v56 = vadd.f32 %v824_v53, %v352_v17  ;;  %v945_v57 = vadd.f32 %v944_v54, %v472_v44  ;;  %2020 = vxpose.xlu0.b32.start [1/16] %v2019_v50, 128 }
  0xed   : > { %v828_v58 = vpop.f32.mrf.mxu0  ;;  %v948_v59 = vpop.f32.mrf.mxu1 }
  0xee   : > { %v2021_v61 = vpack.i.bf16 %v825_v56, %v823_v55  ;;  %v1830_v62 = vpack.c.bf16 %v945_v57, %v943_v52  ;;  %v829_v1 = vadd.f32 %v828_v58, %v357_v16  ;;  %v949_v3 = vadd.f32 %v948_v59, %v477_v60  ;;  %v497_v59 = vpop.permute.xlu0 %496 }
  0xef   : > { %v830_v63 = vpop.f32.mrf.mxu0  ;;  %v950_v0 = vpop.f32.mrf.mxu1 }
  0xf0   : > { %1482 = vst [vmem:[%s2668_s10 + $0x48] sm:$0xff] %v1830_v62  ;;  %v831_v4 = vadd.f32 %v830_v63, %v357_v16  ;;  %v951_v5 = vadd.f32 %v950_v0, %v477_v60  ;;  %2022 = vxpose.xlu0.b32.cont [2/16] %v2021_v61, 128 }
  0xf1   : > { %v832_v6 = vpop.f32.mrf.mxu0  ;;  %v952_v7 = vpop.f32.mrf.mxu1 }
  0xf2   : > { %v2023_v9 = vpack.i.bf16 %v831_v4, %v829_v1  ;;  %v1831_v10 = vpack.c.bf16 %v951_v5, %v949_v3  ;;  %v833_v13 = vadd.f32 %v832_v6, %v2622_v18  ;;  %v953_v14 = vadd.f32 %v952_v7, %v482_v8  ;;  %v502_v6 = vpop.permute.xlu1 %501 }
  0xf3   : > { %v834_v11 = vpop.f32.mrf.mxu0  ;;  %v954_v12 = vpop.f32.mrf.mxu1 }
  0xf4   : > { %1483 = vst [vmem:[%s2668_s10 + $0x50] sm:$0xff] %v1831_v10  ;;  %v835_v15 = vadd.f32 %v834_v11, %v2622_v18  ;;  %v955_v17 = vadd.f32 %v954_v12, %v482_v8  ;;  %2024 = vxpose.xlu0.b32.cont [3/16] %v2023_v9, 128 }
  0xf5   : > { %v838_v38 = vpop.f32.mrf.mxu0  ;;  %v958_v16 = vpop.f32.mrf.mxu1 }
  0xf6   : > { %v2025_v40 = vpack.i.bf16 %v835_v15, %v833_v13  ;;  %v1832_v41 = vpack.c.bf16 %v955_v17, %v953_v14  ;;  %v839_v44 = vadd.f32 %v838_v38, %v2624_v19  ;;  %v959_v45 = vadd.f32 %v958_v16, %v487_v39  ;;  %v507_v17 = vpop.permute.xlu0 %506 }
  0xf7   : > { %v840_v42 = vpop.f32.mrf.mxu0  ;;  %v960_v43 = vpop.f32.mrf.mxu1 }
  0xf8   : > { %1484 = vst [vmem:[%s2668_s10 + $0x58] sm:$0xff] %v1832_v41  ;;  %v841_v46 = vadd.f32 %v840_v42, %v2624_v19  ;;  %v961_v47 = vadd.f32 %v960_v43, %v487_v39  ;;  %2026 = vxpose.xlu0.b32.cont [4/16] %v2025_v40, 128 }
  0xf9   : > { %v842_v48 = vpop.f32.mrf.mxu0  ;;  %v962_v18 = vpop.f32.mrf.mxu1 }
  0xfa   : > { %v2027_v50 = vpack.i.bf16 %v841_v46, %v839_v44  ;;  %v1833_v51 = vpack.c.bf16 %v961_v47, %v959_v45  ;;  %v843_v54 = vadd.f32 %v842_v48, %v2626_v2  ;;  %v963_v55 = vadd.f32 %v962_v18, %v492_v49  ;;  %v512_v46 = vpop.permute.xlu1 %511 }
  0xfb   : > { %v844_v52 = vpop.f32.mrf.mxu0  ;;  %v964_v53 = vpop.f32.mrf.mxu1 }
  0xfc   : > { %1485 = vst [vmem:[%s2668_s10 + $0x60] sm:$0xff] %v1833_v51  ;;  %v845_v56 = vadd.f32 %v844_v52, %v2626_v2  ;;  %v965_v57 = vadd.f32 %v964_v53, %v492_v49  ;;  %2028 = vxpose.xlu0.b32.cont [5/16] %v2027_v50, 128 }
  0xfd   : > { %v848_v58 = vpop.f32.mrf.mxu0  ;;  %v968_v19 = vpop.f32.mrf.mxu1 }
  0xfe   : > { %v2029_v60 = vpack.i.bf16 %v845_v56, %v843_v54  ;;  %v1834_v61 = vpack.c.bf16 %v965_v57, %v963_v55  ;;  %v849_v0 = vadd.f32 %v848_v58, %v2628_v20  ;;  %v969_v1 = vadd.f32 %v968_v19, %v497_v59  ;;  %v517_v55 = vpop.permute.xlu0 %516 }
  0xff   : > { %v850_v62 = vpop.f32.mrf.mxu0  ;;  %v970_v63 = vpop.f32.mrf.mxu1 }
 0x100   : > { %1486 = vst [vmem:[%s2668_s10 + $0x68] sm:$0xff] %v1834_v61  ;;  %v851_v3 = vadd.f32 %v850_v62, %v2628_v20  ;;  %v971_v4 = vadd.f32 %v970_v63, %v497_v59  ;;  %2030 = vxpose.xlu0.b32.cont [6/16] %v2029_v60, 128 }
 0x101   : > { %v852_v5 = vpop.f32.mrf.mxu0  ;;  %v972_v2 = vpop.f32.mrf.mxu1 }
 0x102   : > { %v2031_v7 = vpack.i.bf16 %v851_v3, %v849_v0  ;;  %v1835_v8 = vpack.c.bf16 %v971_v4, %v969_v1  ;;  %v853_v11 = vadd.f32 %v852_v5, %v2630_v21  ;;  %v973_v12 = vadd.f32 %v972_v2, %v502_v6  ;;  %v522_v0 = vpop.permute.xlu1 %521 }
 0x103   : > { %v854_v9 = vpop.f32.mrf.mxu0  ;;  %v974_v10 = vpop.f32.mrf.mxu1 }
 0x104   : > { %1487 = vst [vmem:[%s2668_s10 + $0x70] sm:$0xff] %v1835_v8  ;;  %v855_v13 = vadd.f32 %v854_v9, %v2630_v21  ;;  %v975_v14 = vadd.f32 %v974_v10, %v502_v6  ;;  %2032 = vxpose.xlu0.b32.cont [7/16] %v2031_v7, 128  ;;  %v527_v10 = vpop.permute.xlu0 %526 }
 0x105   : > { %v858_v15 = vpop.f32.mrf.mxu0  ;;  %v978_v20 = vpop.f32.mrf.mxu1 }
 0x106   : > { %v2033_v38 = vpack.i.bf16 %v855_v13, %v853_v11  ;;  %v1836_v16 = vpack.c.bf16 %v975_v14, %v973_v12  ;;  %v859_v41 = vadd.f32 %v858_v15, %v2632_v22  ;;  %v979_v42 = vadd.f32 %v978_v20, %v507_v17 }
 0x107   : > { %v860_v39 = vpop.f32.mrf.mxu0  ;;  %v980_v40 = vpop.f32.mrf.mxu1 }
 0x108   : > { %1488 = vst [vmem:[%s2668_s10 + $0x78] sm:$0xff] %v1836_v16  ;;  %v861_v43 = vadd.f32 %v860_v39, %v2632_v22  ;;  %v981_v44 = vadd.f32 %v980_v40, %v507_v17  ;;  %2034 = vxpose.xlu0.b32.cont [8/16] %v2033_v38, 128  ;;  %v532_v39 = vpop.permute.xlu1 %531 }
 0x109   : > { %v862_v45 = vpop.f32.mrf.mxu0  ;;  %v982_v21 = vpop.f32.mrf.mxu1 }
 0x10a   : > { %v2035_v47 = vpack.i.bf16 %v861_v43, %v859_v41  ;;  %v1837_v48 = vpack.c.bf16 %v981_v44, %v979_v42  ;;  %v863_v50 = vadd.f32 %v862_v45, %v2634_v23  ;;  %v983_v51 = vadd.f32 %v982_v21, %v512_v46 }
 0x10b   : > { %v864_v18 = vpop.f32.mrf.mxu0  ;;  %v984_v49 = vpop.f32.mrf.mxu1 }
 0x10c   : > { %1489 = vst [vmem:[%s2668_s10 + $0x80] sm:$0xff] %v1837_v48  ;;  %v865_v52 = vadd.f32 %v864_v18, %v2634_v23  ;;  %v985_v53 = vadd.f32 %v984_v49, %v512_v46  ;;  %2036 = vxpose.xlu0.b32.cont [9/16] %v2035_v47, 128  ;;  %v537_v48 = vpop.permute.xlu0 %536 }
 0x10d   : > { %v868_v54 = vpop.f32.mrf.mxu0  ;;  %v988_v22 = vpop.f32.mrf.mxu1 }
 0x10e   : > { %v2037_v56 = vpack.i.bf16 %v865_v52, %v863_v50  ;;  %v1838_v57 = vpack.c.bf16 %v985_v53, %v983_v51  ;;  %v869_v59 = vadd.f32 %v868_v54, %v2636_v24  ;;  %v989_v60 = vadd.f32 %v988_v22, %v517_v55 }
 0x10f   : > { %v870_v58 = vpop.f32.mrf.mxu0  ;;  %v990_v19 = vpop.f32.mrf.mxu1 }
 0x110   : > { %1490 = vst [vmem:[%s2668_s10 + $0x88] sm:$0xff] %v1838_v57  ;;  %v871_v61 = vadd.f32 %v870_v58, %v2636_v24  ;;  %v991_v62 = vadd.f32 %v990_v19, %v517_v55  ;;  %2038 = vxpose.xlu0.b32.cont [10/16] %v2037_v56, 128  ;;  %v542_v56 = vpop.permute.xlu1 %541 }
 0x111   : > { %v872_v63 = vpop.f32.mrf.mxu0  ;;  %v992_v23 = vpop.f32.mrf.mxu1 }
 0x112   : > { %v2039_v1 = vpack.i.bf16 %v871_v61, %v869_v59  ;;  %v1839_v3 = vpack.c.bf16 %v991_v62, %v989_v60  ;;  %v873_v2 = vadd.f32 %v872_v63, %v2638_v25  ;;  %v993_v6 = vadd.f32 %v992_v23, %v522_v0 }
 0x113   : > { %v874_v4 = vpop.f32.mrf.mxu0  ;;  %v994_v5 = vpop.f32.mrf.mxu1 }
 0x114   : > { %1491 = vst [vmem:[%s2668_s10 + $0x90] sm:$0xff] %v1839_v3  ;;  %v875_v7 = vadd.f32 %v874_v4, %v2638_v25  ;;  %v995_v8 = vadd.f32 %v994_v5, %v522_v0  ;;  %2040 = vxpose.xlu0.b32.cont [11/16] %v2039_v1, 128  ;;  %v547_v0 = vpop.permute.xlu0 %546 }
 0x115   : > { %v878_v9 = vpop.f32.mrf.mxu0  ;;  %v998_v24 = vpop.f32.mrf.mxu1 }
 0x116   : > { %v2041_v11 = vpack.i.bf16 %v875_v7, %v873_v2  ;;  %v1840_v12 = vpack.c.bf16 %v995_v8, %v993_v6  ;;  %v879_v15 = vadd.f32 %v878_v9, %v2640_v26  ;;  %v999_v20 = vadd.f32 %v998_v24, %v527_v10  ;;  %v552_v24 = vpop.permute.xlu1 %551 }
 0x117   : > { %v880_v13 = vpop.f32.mrf.mxu0  ;;  %v1000_v14 = vpop.f32.mrf.mxu1 }
 0x118   : > { %1492 = vst [vmem:[%s2668_s10 + $0x98] sm:$0xff] %v1840_v12  ;;  %v881_v17 = vadd.f32 %v880_v13, %v2640_v26  ;;  %v1001_v38 = vadd.f32 %v1000_v14, %v527_v10  ;;  %2042 = vxpose.xlu0.b32.cont [12/16] %v2041_v11, 128 }
 0x119   : > { %v882_v16 = vpop.f32.mrf.mxu0  ;;  %v1002_v25 = vpop.f32.mrf.mxu1 }
 0x11a   : > { %v2043_v40 = vpack.i.bf16 %v881_v17, %v879_v15  ;;  %v1841_v41 = vpack.c.bf16 %v1001_v38, %v999_v20  ;;  %v883_v44 = vadd.f32 %v882_v16, %v2642_v27  ;;  %v1003_v45 = vadd.f32 %v1002_v25, %v532_v39  ;;  %v557_v16 = vpop.permute.xlu0 %556 }
 0x11b   : > { %v884_v42 = vpop.f32.mrf.mxu0  ;;  %v1004_v43 = vpop.f32.mrf.mxu1 }
 0x11c   : > { %1493 = vst [vmem:[%s2668_s10 + $0xa0] sm:$0xff] %v1841_v41  ;;  %v885_v21 = vadd.f32 %v884_v42, %v2642_v27  ;;  %v1005_v46 = vadd.f32 %v1004_v43, %v532_v39  ;;  %2044 = vxpose.xlu0.b32.cont [13/16] %v2043_v40, 128 }
 0x11d   : > { %v888_v47 = vpop.f32.mrf.mxu0  ;;  %v1008_v26 = vpop.f32.mrf.mxu1 }
 0x11e   : > { %v2045_v18 = vpack.i.bf16 %v885_v21, %v883_v44  ;;  %v1842_v49 = vpack.c.bf16 %v1005_v46, %v1003_v45  ;;  %v889_v52 = vadd.f32 %v888_v47, %v2644_v28  ;;  %v1009_v53 = vadd.f32 %v1008_v26, %v537_v48  ;;  %v562_v46 = vpop.permute.xlu1 %561 }
 0x11f   : > { %v890_v50 = vpop.f32.mrf.mxu0  ;;  %v1010_v51 = vpop.f32.mrf.mxu1 }
 0x120   : > { %1494 = vst [vmem:[%s2668_s10 + $0xa8] sm:$0xff] %v1842_v49  ;;  %v891_v54 = vadd.f32 %v890_v50, %v2644_v28  ;;  %v1011_v22 = vadd.f32 %v1010_v51, %v537_v48  ;;  %2046 = vxpose.xlu0.b32.cont [14/16] %v2045_v18, 128 }
 0x121   : > { %v892_v55 = vpop.f32.mrf.mxu0  ;;  %v1012_v27 = vpop.f32.mrf.mxu1 }
 0x122   : > { %v2047_v57 = vpack.i.bf16 %v891_v54, %v889_v52  ;;  %v1843_v58 = vpack.c.bf16 %v1011_v22, %v1009_v53  ;;  %v893_v60 = vadd.f32 %v892_v55, %v2646_v29  ;;  %v1013_v61 = vadd.f32 %v1012_v27, %v542_v56  ;;  %v567_v54 = vpop.permute.xlu0 %566 }
 0x123   : > { %v894_v19 = vpop.f32.mrf.mxu0  ;;  %v1014_v59 = vpop.f32.mrf.mxu1 }
 0x124   : > { %1495 = vst [vmem:[%s2668_s10 + $0xb0] sm:$0xff] %v1843_v58  ;;  %v895_v62 = vadd.f32 %v894_v19, %v2646_v29  ;;  %v1015_v63 = vadd.f32 %v1014_v59, %v542_v56  ;;  %2048 = vxpose.xlu0.b32.cont [15/16] %v2047_v57, 128 }
 0x125   : > { %v898_v23 = vpop.f32.mrf.mxu0  ;;  %v1018_v28 = vpop.f32.mrf.mxu1 }
 0x126   : > { %v2049_v1 = vpack.i.bf16 %v895_v62, %v893_v60  ;;  %v1844_v3 = vpack.c.bf16 %v1015_v63, %v1013_v61  ;;  %v899_v2 = vadd.f32 %v898_v23, %v2648_v30  ;;  %v1019_v6 = vadd.f32 %v1018_v28, %v547_v0  ;;  %v572_v61 = vpop.permute.xlu1 %571 }
 0x127   : > { %v900_v4 = vpop.f32.mrf.mxu0  ;;  %v1020_v5 = vpop.f32.mrf.mxu1 }
 0x128   : > { %1496 = vst [vmem:[%s2668_s10 + $0xb8] sm:$0xff] %v1844_v3  ;;  %v901_v7 = vadd.f32 %v900_v4, %v2648_v30  ;;  %v1021_v8 = vadd.f32 %v1020_v5, %v547_v0  ;;  %2050 = vxpose.xlu0.b32.end [16/16] %v2049_v1, 128 }
 0x129   : > { %v902_v29 = vpop.f32.mrf.mxu0  ;;  %v1022_v9 = vpop.f32.mrf.mxu1 }
 0x12a   : > { %v1821_v10 = vpack.c.bf16 %v901_v7, %v899_v2  ;;  %v1845_v11 = vpack.c.bf16 %v1021_v8, %v1019_v6  ;;  %v903_v14 = vadd.f32 %v902_v29, %v2650_v31  ;;  %v1023_v15 = vadd.f32 %v1022_v9, %v552_v24  ;;  %v577_v2 = vpop.permute.xlu0 %576 }
 0x12b   : > { %v904_v12 = vpop.f32.mrf.mxu0  ;;  %v1024_v13 = vpop.f32.mrf.mxu1 }
 0x12c   : > { %1473 = vst [vmem:[%s2668_s10] sm:$0xff] %v1821_v10  ;;  %1497 = vst [vmem:[%s2668_s10 + $0xc0] sm:$0xff] %v1845_v11  ;;  %v905_v20 = vadd.f32 %v904_v12, %v2650_v31  ;;  %v1025_v17 = vadd.f32 %v1024_v13, %v552_v24  ;;  %v582_v13 = vpop.permute.xlu1 %581 }
 0x12d   : > { %v908_v30 = vpop.f32.mrf.mxu0  ;;  %v1028_v38 = vpop.f32.mrf.mxu1 }
 0x12e   : > { %v1822_v25 = vpack.c.bf16 %v905_v20, %v903_v14  ;;  %v1846_v39 = vpack.c.bf16 %v1025_v17, %v1023_v15  ;;  %v909_v42 = vadd.f32 %v908_v30, %v2652_v32  ;;  %v1029_v43 = vadd.f32 %v1028_v38, %v557_v16 }
 0x12f   : > { %v910_v40 = vpop.f32.mrf.mxu0  ;;  %v1030_v41 = vpop.f32.mrf.mxu1 }
 0x130   : > { %1474 = vst [vmem:[%s2668_s10 + $0x8] sm:$0xff] %v1822_v25  ;;  %1498 = vst [vmem:[%s2668_s10 + $0xc8] sm:$0xff] %v1846_v39  ;;  %v911_v44 = vadd.f32 %v910_v40, %v2652_v32  ;;  %v1031_v45 = vadd.f32 %v1030_v41, %v557_v16 }
 0x131   : > { %v912_v21 = vpop.f32.mrf.mxu0  ;;  %v1032_v31 = vpop.f32.mrf.mxu1 }
 0x132   : > { %v1823_v47 = vpack.c.bf16 %v911_v44, %v909_v42  ;;  %v1847_v26 = vpack.c.bf16 %v1031_v45, %v1029_v43  ;;  %v913_v49 = vadd.f32 %v912_v21, %v2654_v33  ;;  %v1033_v50 = vadd.f32 %v1032_v31, %v562_v46 }
 0x133   : > { %v914_v48 = vpop.f32.mrf.mxu0  ;;  %v1034_v18 = vpop.f32.mrf.mxu1 }
 0x134   : > { %1475 = vst [vmem:[%s2668_s10 + $0x10] sm:$0xff] %v1823_v47  ;;  %1499 = vst [vmem:[%s2668_s10 + $0xd0] sm:$0xff] %v1847_v26  ;;  %v915_v51 = vadd.f32 %v914_v48, %v2654_v33  ;;  %v1035_v52 = vadd.f32 %v1034_v18, %v562_v46 }
 0x135   : > { %v918_v53 = vpop.f32.mrf.mxu0  ;;  %v1038_v32 = vpop.f32.mrf.mxu1 }
 0x136   : > { %v1824_v22 = vpack.c.bf16 %v915_v51, %v913_v49  ;;  %v1848_v55 = vpack.c.bf16 %v1035_v52, %v1033_v50  ;;  %v919_v57 = vadd.f32 %v918_v53, %v2656_v34  ;;  %v1039_v58 = vadd.f32 %v1038_v32, %v567_v54 }
 0x137   : > { %v920_v27 = vpop.f32.mrf.mxu0  ;;  %v1040_v56 = vpop.f32.mrf.mxu1 }
 0x138   : > { %1476 = vst [vmem:[%s2668_s10 + $0x18] sm:$0xff] %v1824_v22  ;;  %1500 = vst [vmem:[%s2668_s10 + $0xd8] sm:$0xff] %v1848_v55  ;;  %v921_v19 = vadd.f32 %v920_v27, %v2656_v34  ;;  %v1041_v59 = vadd.f32 %v1040_v56, %v567_v54 }
 0x139   : > { %v922_v60 = vpop.f32.mrf.mxu0  ;;  %v1042_v33 = vpop.f32.mrf.mxu1 }
 0x13a   : > { %v1825_v62 = vpack.c.bf16 %v921_v19, %v919_v57  ;;  %v1849_v63 = vpack.c.bf16 %v1041_v59, %v1039_v58  ;;  %v923_v0 = vadd.f32 %v922_v60, %v2658_v35  ;;  %v1043_v1 = vadd.f32 %v1042_v33, %v572_v61 }
 0x13b   : > { %v924_v23 = vpop.f32.mrf.mxu0  ;;  %v1044_v28 = vpop.f32.mrf.mxu1 }
 0x13c   : > { %1477 = vst [vmem:[%s2668_s10 + $0x20] sm:$0xff] %v1825_v62  ;;  %1501 = vst [vmem:[%s2668_s10 + $0xe0] sm:$0xff] %v1849_v63  ;;  %v925_v3 = vadd.f32 %v924_v23, %v2658_v35  ;;  %v1045_v4 = vadd.f32 %v1044_v28, %v572_v61 }
 0x13d   : > { %v928_v5 = vpop.f32.mrf.mxu0  ;;  %v1048_v34 = vpop.f32.mrf.mxu1 }
 0x13e   : > { %v1826_v6 = vpack.c.bf16 %v925_v3, %v923_v0  ;;  %v1850_v7 = vpack.c.bf16 %v1045_v4, %v1043_v1  ;;  %v929_v9 = vadd.f32 %v928_v5, %v2660_v36  ;;  %v1049_v24 = vadd.f32 %v1048_v34, %v577_v2 }
 0x13f   : > { %v930_v8 = vpop.f32.mrf.mxu0  ;;  %v1050_v29 = vpop.f32.mrf.mxu1 }
 0x140   : > { %1478 = vst [vmem:[%s2668_s10 + $0x28] sm:$0xff] %v1826_v6  ;;  %1502 = vst [vmem:[%s2668_s10 + $0xe8] sm:$0xff] %v1850_v7  ;;  %v931_v10 = vadd.f32 %v930_v8, %v2660_v36  ;;  %v1051_v35 = vadd.f32 %v1050_v29, %v577_v2 }
 0x141   : > { %v932_v11 = vpop.f32.mrf.mxu0  ;;  %v1052_v12 = vpop.f32.mrf.mxu1 }
 0x142   : > { %v1827_v14 = vpack.c.bf16 %v931_v10, %v929_v9  ;;  %v1851_v15 = vpack.c.bf16 %v1051_v35, %v1049_v24  ;;  %v933_v30 = vadd.f32 %v932_v11, %v2662_v37  ;;  %v1053_v38 = vadd.f32 %v1052_v12, %v582_v13 }
 0x143   : > { %v934_v20 = vpop.f32.mrf.mxu0  ;;  %v1054_v17 = vpop.f32.mrf.mxu1 }
 0x144   : > { %1479 = vst [vmem:[%s2668_s10 + $0x30] sm:$0xff] %v1827_v14  ;;  %1503 = vst [vmem:[%s2668_s10 + $0xf0] sm:$0xff] %v1851_v15  ;;  %v935_v36 = vadd.f32 %v934_v20, %v2662_v37  ;;  %v1055_v16 = vadd.f32 %v1054_v17, %v582_v13 }
 0x146   : > { %v1828_v25 = vpack.c.bf16 %v935_v36, %v933_v30  ;;  %v1852_v39 = vpack.c.bf16 %v1055_v16, %v1053_v38 }
 0x148   : > { %1480 = vst [vmem:[%s2668_s10 + $0x38] sm:$0xff] %v1828_v25  ;;  %1504 = vst [vmem:[%s2668_s10 + $0xf8] sm:$0xff] %v1852_v39 }
 0x149   : > { %2169 = shalt.err (!%p2166_p5)
}
 0x14a   : > { %s2170_s5 = scalar_lea.hbm %s2747_s21, 4096  ;;  %s2174_s9 = scalar_lea.hbm %s2853_s4, 8192 }
 0x14b   : > { %p2171_p6 = scmp.ne.s32.totalorder %s2747_s21, %s2170_s5  ;;  %p2175_p10 = scmp.lt.s32.totalorder %s2747_s21, %s2853_s4 }
 0x14c   : > { %p2176_p11 = scmp.lt.s32.totalorder %s2174_s9, %s2170_s5 }
 0x14d   : > { %p2172_p7 = pnand %p2171_p6, %p2336_p4 }
 0x14e   : > { %p2177_p12 = por %p2176_p11, %p2175_p10 }
 0x14f   : > { %p2173_p9 = pneg %p2172_p7 }
 0x151   : > { %p2178_p13 = pnand %p2177_p12, %p2173_p9 }
 0x153   : > { %2181 = shalt.err (!%p2178_p13)
}
 0x154   : > { %s2266_s13 = smov 128   ;;  %s2267_s14 = smov 8  }
 0x155   : > { %1953 = dma.vmem_to_hbm [thread:$0]  (%p2336_p4), %s2749_s12, 4096, %s2747_s21, %s1511_s22, %s2266_s13, %s2266_s13, %s2267_s14  }
 0x156   : > { %s1663_s24 = sshll.u32 %s2665_s8, 7  ;;  %s1853_s12 = sshll.u32 %s2254_s18, 11 }
 0x157   : > { %s2777_s26 = scalar_lea.vmem [#allocation2], %s1663_s24  ;;  %s2798_s30 = scalar_lea.hbm %s2852_s3, %s1853_s12 }
 0x158   : > { %s1526_s21 = sshll.u32 %s2777_s26, 4  ;;  %s1506_s18 = scalar_lea.sflag [#allocation3], %s2665_s8  ;;  %s2800_s21 = int_to_ptr.vmem [resolvable:$true] %s1526_s21 }
 0x159   : > { %s2182_s5 = scalar_lea.vmem %s2800_s21, 2048  ;;  %s2268_s6 = smov [#allocation2]  }
 0x15a   : > { %p2183_p0 = scmp.ne.s32.totalorder %s2800_s21, %s2182_s5  ;;  %s2186_s7 = sshll.u32 %s2268_s6, 4  ;;  %s2187_s7 = int_to_ptr.vmem [resolvable:$false] %s2186_s7 }
 0x15b   : > { %s2188_s9 = scalar_lea.vmem %s2187_s7, 4096  ;;  %p2189_p3 = scmp.lt.s32.totalorder %s2800_s21, %s2187_s7 }
 0x15c   : > { %p2184_p1 = pnand %p2183_p0, %p2336_p4  ;;  %p2190_p5 = scmp.lt.s32.totalorder %s2188_s9, %s2182_s5 }
 0x15e   : > { %p2185_p2 = pneg %p2184_p1  ;;  %p2191_p6 = por %p2190_p5, %p2189_p3 }
 0x160   : > { %p2192_p7 = pnand %p2191_p6, %p2185_p2 }
 0x168   : > { %v2051_v37 = vpop.trf.xlu0 }
 0x169   : > { %v2055_v40 = vunpack.i.h.bf16 %v2051_v37  ;;  %v2052_v41 = vunpack.i.l.bf16 %v2051_v37 }
 0x16c   : > { %v2056_v42 = vpop.trf.xlu0 }
 0x16d   : > { %v2060_v43 = vunpack.i.h.bf16 %v2056_v42  ;;  %v2057_v44 = vunpack.i.l.bf16 %v2056_v42 }
 0x16f   : > { %v1858_v45 = vpack.c.bf16 %v2057_v44, %v2052_v41  ;;  %v1898_v21 = vpack.c.bf16 %v2060_v43, %v2055_v40 }
 0x170   : > { %v2061_v31 = vpop.trf.xlu0 }
 0x171   : > { %1859 = vst [vmem:[%s2777_s26] sm:$0xff] %v1858_v45   ;;  %1942 = vst [vmem:[%s2777_s26 + $0x40] sm:$0xff] %v1898_v21   ;;  %v2065_v46 = vunpack.i.h.bf16 %v2061_v31  ;;  %v2062_v47 = vunpack.i.l.bf16 %v2061_v31 }
 0x174   : > { %v2066_v26 = vpop.trf.xlu0 }
 0x175   : > { %v2070_v48 = vunpack.i.h.bf16 %v2066_v26  ;;  %v2067_v18 = vunpack.i.l.bf16 %v2066_v26 }
 0x177   : > { %v1863_v49 = vpack.c.bf16 %v2067_v18, %v2062_v47  ;;  %v1903_v50 = vpack.c.bf16 %v2070_v48, %v2065_v46 }
 0x178   : > { %v2071_v51 = vpop.trf.xlu0 }
 0x179   : > { %1935 = vst [vmem:[%s2777_s26 + $0x8] sm:$0xff] %v1863_v49   ;;  %1943 = vst [vmem:[%s2777_s26 + $0x48] sm:$0xff] %v1903_v50   ;;  %v2075_v52 = vunpack.i.h.bf16 %v2071_v51  ;;  %v2072_v53 = vunpack.i.l.bf16 %v2071_v51 }
 0x17c   : > { %v2076_v32 = vpop.trf.xlu0 }
 0x17d   : > { %v2080_v54 = vunpack.i.h.bf16 %v2076_v32  ;;  %v2077_v22 = vunpack.i.l.bf16 %v2076_v32 }
 0x17f   : > { %v1868_v55 = vpack.c.bf16 %v2077_v22, %v2072_v53  ;;  %v1908_v27 = vpack.c.bf16 %v2080_v54, %v2075_v52 }
 0x180   : > { %v2081_v56 = vpop.trf.xlu0 }
 0x181   : > { %1936 = vst [vmem:[%s2777_s26 + $0x10] sm:$0xff] %v1868_v55   ;;  %1944 = vst [vmem:[%s2777_s26 + $0x50] sm:$0xff] %v1908_v27   ;;  %v2085_v57 = vunpack.i.h.bf16 %v2081_v56  ;;  %v2082_v58 = vunpack.i.l.bf16 %v2081_v56 }
 0x184   : > { %v2086_v19 = vpop.trf.xlu0 }
 0x185   : > { %v2090_v59 = vunpack.i.h.bf16 %v2086_v19  ;;  %v2087_v60 = vunpack.i.l.bf16 %v2086_v19 }
 0x187   : > { %v1873_v33 = vpack.c.bf16 %v2087_v60, %v2082_v58  ;;  %v1913_v61 = vpack.c.bf16 %v2090_v59, %v2085_v57 }
 0x188   : > { %v2091_v62 = vpop.trf.xlu0 }
 0x189   : > { %1937 = vst [vmem:[%s2777_s26 + $0x18] sm:$0xff] %v1873_v33   ;;  %1945 = vst [vmem:[%s2777_s26 + $0x58] sm:$0xff] %v1913_v61   ;;  %v2095_v63 = vunpack.i.h.bf16 %v2091_v62  ;;  %v2092_v23 = vunpack.i.l.bf16 %v2091_v62 }
 0x18c   : > { %v2096_v28 = vpop.trf.xlu0 }
 0x18d   : > { %v2100_v0 = vunpack.i.h.bf16 %v2096_v28  ;;  %v2097_v1 = vunpack.i.l.bf16 %v2096_v28 }
 0x18f   : > { %v1878_v3 = vpack.c.bf16 %v2097_v1, %v2092_v23  ;;  %v1918_v4 = vpack.c.bf16 %v2100_v0, %v2095_v63 }
 0x190   : > { %v2101_v5 = vpop.trf.xlu0 }
 0x191   : > { %1938 = vst [vmem:[%s2777_s26 + $0x20] sm:$0xff] %v1878_v3   ;;  %1946 = vst [vmem:[%s2777_s26 + $0x60] sm:$0xff] %v1918_v4   ;;  %v2105_v34 = vunpack.i.h.bf16 %v2101_v5  ;;  %v2102_v2 = vunpack.i.l.bf16 %v2101_v5 }
 0x194   : > { %v2106_v6 = vpop.trf.xlu0 }
 0x195   : > { %v2110_v7 = vunpack.i.h.bf16 %v2106_v6  ;;  %v2107_v8 = vunpack.i.l.bf16 %v2106_v6 }
 0x197   : > { %v1883_v29 = vpack.c.bf16 %v2107_v8, %v2102_v2  ;;  %v1923_v9 = vpack.c.bf16 %v2110_v7, %v2105_v34 }
 0x198   : > { %v2111_v24 = vpop.trf.xlu0 }
 0x199   : > { %1939 = vst [vmem:[%s2777_s26 + $0x28] sm:$0xff] %v1883_v29   ;;  %1947 = vst [vmem:[%s2777_s26 + $0x68] sm:$0xff] %v1923_v9   ;;  %v2115_v10 = vunpack.i.h.bf16 %v2111_v24  ;;  %v2112_v35 = vunpack.i.l.bf16 %v2111_v24 }
 0x19c   : > { %v2116_v11 = vpop.trf.xlu0 }
 0x19d   : > { %v2120_v12 = vunpack.i.h.bf16 %v2116_v11  ;;  %v2117_v13 = vunpack.i.l.bf16 %v2116_v11 }
 0x19f   : > { %v1888_v14 = vpack.c.bf16 %v2117_v13, %v2112_v35  ;;  %v1928_v15 = vpack.c.bf16 %v2120_v12, %v2115_v10 }
 0x1a0   : > { %v2121_v20 = vpop.trf.xlu0 }
 0x1a1   : > { %1940 = vst [vmem:[%s2777_s26 + $0x30] sm:$0xff] %v1888_v14   ;;  %1948 = vst [vmem:[%s2777_s26 + $0x70] sm:$0xff] %v1928_v15   ;;  %v2125_v17 = vunpack.i.h.bf16 %v2121_v20  ;;  %v2122_v30 = vunpack.i.l.bf16 %v2121_v20 }
 0x1a4   : > { %v2126_v38 = vpop.trf.xlu0 }
 0x1a5   : > { %v2130_v36 = vunpack.i.h.bf16 %v2126_v38  ;;  %v2127_v16 = vunpack.i.l.bf16 %v2126_v38 }
 0x1a7   : > { %v1893_v25 = vpack.c.bf16 %v2127_v16, %v2122_v30  ;;  %v1933_v39 = vpack.c.bf16 %v2130_v36, %v2125_v17 }
 0x1a9   : > { %1941 = vst [vmem:[%s2777_s26 + $0x38] sm:$0xff] %v1893_v25   ;;  %1949 = vst [vmem:[%s2777_s26 + $0x78] sm:$0xff] %v1933_v39  }
 0x1aa   : > { %2195 = shalt.err (!%p2192_p7)
}
 0x1ab   : > { %s2196_s10 = scalar_lea.hbm %s2798_s30, 2048  ;;  %s2200_s14 = scalar_lea.hbm %s2852_s3, 4096 }
 0x1ac   : > { %p2197_p9 = scmp.ne.s32.totalorder %s2798_s30, %s2196_s10  ;;  %p2201_p12 = scmp.lt.s32.totalorder %s2798_s30, %s2852_s3 }
 0x1ad   : > { %p2202_p13 = scmp.lt.s32.totalorder %s2200_s14, %s2196_s10 }
 0x1ae   : > { %p2198_p10 = pnand %p2197_p9, %p2336_p4 }
 0x1af   : > { %p2203_p0 = por %p2202_p13, %p2201_p12 }
 0x1b0   : > { %p2199_p11 = pneg %p2198_p10 }
 0x1b2   : > { %p2204_p1 = pnand %p2203_p0, %p2199_p11 }
 0x1b4   : > { %2207 = shalt.err (!%p2204_p1)
}
 0x1b5   : > { %s2269_s12 = smov 64   ;;  %s2270_s22 = smov 4  }
 0x1b6   : > { %1952 = dma.vmem_to_hbm [thread:$0]  (%p2336_p4), %s2800_s21, 2048, %s2798_s30, %s1506_s18, %s2269_s12, %s2269_s12, %s2270_s22  }
 0x1b7 PF: > { %p1963_p2 = scmp.ge.s32.totalorder %s2262_s20, 2  ;;  %s1559_s29 = sand.u32 1, %s2242_s15  }
 0x1b8   : > { %s1560_s5 = scalar_lea.sflag [#allocation3], %s1559_s29 }
 0x1b9   : > { %p1957_p3 = pnand %p1963_p2, %p2343_p8 }
 0x1bb   : > { %p1958_p5 = pneg %p1957_p3 }
 0x1bd   : > { %2233 = dma.done.wait (%p1958_p5), %s1560_s5, 2048  }
 0x1be   : > { %2235 = vsyncadd (%p1958_p5), %s1560_s5, 4294965248  ;;  %s1569_s6 = scalar_lea.sflag [#allocation5], %s1559_s29 }
 0x1bf   : > { %2237 = dma.done.wait (%p1958_p5), %s1569_s6, 4096  }
 0x1c0   : > { %2239 = vsyncadd (%p1958_p5), %s1569_s6, 4294963200  ;;  %s21_s20 = sadd.s32 1, %s2262_s20   ;;  %s2856_s15 = smov %s2246_s16 }
 0x1c1   : > { %p18_p6 = scmp.ge.s32.totalorder %s21_s20, 4   ;;  %s2857_s16 = smov %s2250_s17 }
 0x1c2   : > { %s2858_s17 = smov %s2349_s28  ;;  %s2859_s18 = smov %s2258_s19 }
 0x1c3   : > { %s2860_s19 = smov %s2862_s23  ;;  %20 = sbr.rel (!%p18_p6) target bundleno = 6 (0x6), region = 84 }
 0x1c8   :  { %1574 = vsyncpa [#allocation3], 1 }
 0x1c9   :  { %1576 = vsyncpa [#allocation3 + $0x1], 1 }
 0x1ca   :  { %1577 = vsyncpa [#allocation5], 1 }
 0x1cb   :  { %1579 = vsyncpa [#allocation5 + $0x1], 1 }

</bundles_post_ra>
